<compile_context>
chip_gen: v7x
topology: tpu7x:2x2x1
jax: 0.10.0
libtpu: 0.0.40
codegen_flags: <defaults>
</compile_context>

<pallas_src>
import jax
import jax.numpy as jnp
from jax.experimental import pallas as pl
from jax.experimental.pallas import tpu as pltpu

# ---- module-consistent hyperparameters (toy sizes) ----
VOCAB = 50
POS_SIZE = 32
WORD_DIM = 16
POS_DIM = 8
D = WORD_DIM + 2 * POS_DIM      # 32 : embedding dim fed to the CNN
C = 32                          # conv out channels
K = 3                           # conv kernel size (padding = K//2, "same")
PAD = K // 2
H = 32                          # fc1 output dim
L = 8                           # sequence length
B = 2                           # batch
BL = B * L
EMB_PAD = 128                   # VOCAB + 2*POS_SIZE = 114 -> padded to a full 128-lane dim
HEAD_OFF = VOCAB                # 50
TAIL_OFF = VOCAB + POS_SIZE     # 82
NEG_SLOPE = 0.01                # F.leaky_relu default


def _cnn_fc_kernel(wid_ref, hid_ref, tid_ref, lens_ref,
                   tbl_ref, wconv_ref, bconv_ref, wfc_ref, bfc_ref, o_ref):
    """Single grid step over the whole batch.

    wid/hid/tid : (B*L, 1) int32 token / position ids
    lens_ref    : (B, 1)   int32 sequence lengths
    tbl_ref     : (128, D) bf16  block-diagonal packed embedding table
    wconv_ref   : (K, D, C) bf16 conv taps (wconv[k] multiplies x[l-1+k])
    bconv_ref   : (1, C)   f32
    wfc_ref     : (C, H)   bf16
    bfc_ref     : (1, H)   f32
    o_ref       : (B, H)   f32
    """
    # --- fused embedding lookup: one-hot (B*L,128) @ packed table (128,D) on the MXU ---
    col = jax.lax.broadcasted_iota(jnp.int32, (BL, EMB_PAD), 1)
    hit = ((col == wid_ref[...]) |
           (col == hid_ref[...] + HEAD_OFF) |
           (col == tid_ref[...] + TAIL_OFF))                 # disjoint id ranges
    onehot = jnp.where(hit, 1.0, 0.0).astype(jnp.bfloat16)   # exact 0/1 in bf16
    x = jnp.dot(onehot, tbl_ref[...],
                preferred_element_type=jnp.float32)          # (B*L, D) == concat(word,head,tail)
    x = x.astype(jnp.bfloat16)                               # rows are bf16 table entries (exact)

    # --- Conv1d(D, C, K=3, padding="same") as 3 accumulated MXU matmuls + row shifts ---
    y0 = jnp.dot(x, wconv_ref[0], preferred_element_type=jnp.float32)  # tap 0: pairs with x[l-1]
    y1 = jnp.dot(x, wconv_ref[1], preferred_element_type=jnp.float32)  # tap 1: pairs with x[l]
    y2 = jnp.dot(x, wconv_ref[2], preferred_element_type=jnp.float32)  # tap 2: pairs with x[l+1]

    r = jax.lax.broadcasted_iota(jnp.int32, (BL, C), 0)
    l_in_seq = r % L                                         # position within each sequence
    down = pltpu.roll(y0, shift=1, axis=0)                   # down[r] = y0[r-1]
    down = jnp.where(l_in_seq == 0, 0.0, down)               # zero at seq starts ("same" pad)
    up = pltpu.roll(y2, shift=BL - 1, axis=0)                # up[r] = y2[r+1]  (BL-1 == -1 mod BL)
    up = jnp.where(l_in_seq == L - 1, 0.0, up)               # zero at seq ends

    conv = y1 + down + up + bconv_ref[...]                   # (B*L, C) f32
    h = jnp.maximum(conv, 0.0)                               # ReLU

    # --- masked max-pool over L (lens broadcast-compared against an iota) ---
    h3 = h.reshape(B, L, C)
    l_iota = jax.lax.broadcasted_iota(jnp.int32, (B, L, C), 1)
    valid = l_iota < lens_ref[...].reshape(B, 1, 1)
    # 0.0 fill == masked_fill(-inf) for lens>=1 since h>=0 post-ReLU; also NaN-safe for lens==0.
    pooled = jnp.max(jnp.where(valid, h3, 0.0), axis=1)      # (B, C)

    # --- fc1 + leaky_relu (bf16 MXU operands, f32 epilogue) ---
    out = jnp.dot(pooled.astype(jnp.bfloat16), wfc_ref[...],
                  preferred_element_type=jnp.float32) + bfc_ref[...]   # (B, H)
    o_ref[...] = jnp.where(out > 0.0, out, NEG_SLOPE * out)


def init_params(key):
    """Parameters in the original PyTorch layouts."""
    ks = jax.random.split(key, 7)
    s = 0.1
    return {
        "word_emb":     s * jax.random.normal(ks[0], (VOCAB, WORD_DIM), jnp.float32),
        "head_pos_emb": s * jax.random.normal(ks[1], (POS_SIZE, POS_DIM), jnp.float32),
        "tail_pos_emb": s * jax.random.normal(ks[2], (POS_SIZE, POS_DIM), jnp.float32),
        "conv_w":       s * jax.random.normal(ks[3], (C, D, K), jnp.float32),  # Conv1d (C_out, C_in, K)
        "conv_b":       s * jax.random.normal(ks[4], (C,), jnp.float32),
        "fc1_w":        s * jax.random.normal(ks[5], (H, C), jnp.float32),     # Linear (out, in)
        "fc1_b":        s * jax.random.normal(ks[6], (H,), jnp.float32),
    }


def prepare_kernel_params(params):
    """One-time PyTorch-layout -> kernel-layout conversion (zero per-call XLA ops)."""
    # Block-diagonal packed embedding table, zero-padded to a 128-lane contraction dim.
    tbl = jnp.zeros((EMB_PAD, D), jnp.float32)
    tbl = tbl.at[:VOCAB, :WORD_DIM].set(params["word_emb"])
    tbl = tbl.at[HEAD_OFF:HEAD_OFF + POS_SIZE, WORD_DIM:WORD_DIM + POS_DIM].set(params["head_pos_emb"])
    tbl = tbl.at[TAIL_OFF:TAIL_OFF + POS_SIZE, WORD_DIM + POS_DIM:D].set(params["tail_pos_emb"])
    # PyTorch Conv1d weight (C_out, C_in, K) -> (K, C_in, C_out); wconv[k] multiplies x[l-1+k].
    wconv = jnp.transpose(params["conv_w"], (2, 1, 0))
    return {
        "table": tbl.astype(jnp.bfloat16),
        "wconv": wconv.astype(jnp.bfloat16),
        "bconv": params["conv_b"].reshape(1, C).astype(jnp.float32),
        "wfc":   params["fc1_w"].T.astype(jnp.bfloat16),           # (C, H)
        "bfc":   params["fc1_b"].reshape(1, H).astype(jnp.float32),
    }


def cnn_fc_extractor_forward(word, lens, head_pos, tail_pos, kp):
    # Only trivial id/len reshapes remain outside the kernel; embedding lookup, conv,
    # masked max-pool and fc1 all run inside one fused Pallas step.
    wid = word.reshape(BL, 1).astype(jnp.int32)
    hid = head_pos.reshape(BL, 1).astype(jnp.int32)
    tid = tail_pos.reshape(BL, 1).astype(jnp.int32)
    lens2 = lens.reshape(B, 1).astype(jnp.int32)
    return pl.pallas_call(
        _cnn_fc_kernel,
        out_shape=jax.ShapeDtypeStruct((B, H), jnp.float32),
        grid=(1,),
        in_specs=[
            pl.BlockSpec((BL, 1), lambda i: (0, 0)),          # word ids
            pl.BlockSpec((BL, 1), lambda i: (0, 0)),          # head_pos ids
            pl.BlockSpec((BL, 1), lambda i: (0, 0)),          # tail_pos ids
            pl.BlockSpec((B, 1), lambda i: (0, 0)),           # lens
            pl.BlockSpec((EMB_PAD, D), lambda i: (0, 0)),     # packed embedding table
            pl.BlockSpec((K, D, C), lambda i: (0, 0, 0)),     # conv taps
            pl.BlockSpec((1, C), lambda i: (0, 0)),           # conv bias
            pl.BlockSpec((C, H), lambda i: (0, 0)),           # fc1 weight
            pl.BlockSpec((1, H), lambda i: (0, 0)),           # fc1 bias
        ],
        out_specs=pl.BlockSpec((B, H), lambda i: (0, 0)),
        compiler_params=pltpu.CompilerParams(dimension_semantics=("arbitrary",)),
    )(wid, hid, tid, lens2, kp["table"], kp["wconv"], kp["bconv"], kp["wfc"], kp["bfc"])


def reference_forward(word, lens, head_pos, tail_pos, params):
    """Pure-JAX mirror of the PyTorch module (weights rounded through bf16 like the kernel)."""
    bf = lambda a: a.astype(jnp.bfloat16).astype(jnp.float32)
    we, he, te = bf(params["word_emb"]), bf(params["head_pos_emb"]), bf(params["tail_pos_emb"])
    cw, fw = bf(params["conv_w"]), bf(params["fc1_w"])
    x = jnp.concatenate([we[word], he[head_pos], te[tail_pos]], axis=-1)          # (B, L, D)
    xp = jnp.pad(x, ((0, 0), (PAD, PAD), (0, 0)))                                 # "same" pad
    conv = sum(jnp.einsum("bld,cd->blc", xp[:, k:k + L, :], cw[:, :, k]) for k in range(K))
    conv = conv + params["conv_b"]
    h = jnp.maximum(conv, 0.0)
    mask = jnp.arange(L)[None, :] < lens[:, None]
    h = jnp.where(mask[:, :, None], h, -jnp.inf)                                  # masked_fill(-inf)
    pooled = jnp.max(h, axis=1)
    pooled = pooled.astype(jnp.bfloat16).astype(jnp.float32)                      # mirror kernel cast
    out = pooled @ fw.T + params["fc1_b"]
    return jnp.where(out > 0.0, out, NEG_SLOPE * out)


if __name__ == "__main__":
    key = jax.random.PRNGKey(0)
    pkey, k_word, k_hp, k_tp = jax.random.split(key, 4)
    params = init_params(pkey)
    kparams = prepare_kernel_params(params)       # one-time weight repack

    word = jax.random.randint(k_word, (B, L), 0, VOCAB, dtype=jnp.int32)
    head_pos = jax.random.randint(k_hp, (B, L), 0, POS_SIZE, dtype=jnp.int32)
    tail_pos = jax.random.randint(k_tp, (B, L), 0, POS_SIZE, dtype=jnp.int32)
    lens = jnp.array([L, L - 3], dtype=jnp.int32)  # second sequence has padding (lens >= 1)

    out = cnn_fc_extractor_forward(word, lens, head_pos, tail_pos, kparams)
    out = jax.block_until_ready(out)

    ref = reference_forward(word, lens, head_pos, tail_pos, params)
    assert out.shape == (B, H) and out.dtype == jnp.float32
    assert bool(jnp.all(jnp.isfinite(out)))
    assert jnp.allclose(out, ref, atol=1e-3, rtol=1e-2), (out, ref)
    print("KERNEL_OK")
</pallas_src>

<mosaic_0001>
module attributes {stable_mosaic.version = 11 : i64} {
  func.func @_cnn_fc_kernel(%arg0: i32, %arg1: memref<16x1xi32, #tpu.memory_space<vmem>>, %arg2: memref<16x1xi32, #tpu.memory_space<vmem>>, %arg3: memref<16x1xi32, #tpu.memory_space<vmem>>, %arg4: memref<2x1xi32, #tpu.memory_space<vmem>>, %arg5: memref<128x32xbf16, #tpu.memory_space<vmem>>, %arg6: memref<3x32x32xbf16, #tpu.memory_space<vmem>>, %arg7: memref<1x32xf32, #tpu.memory_space<vmem>>, %arg8: memref<32x32xbf16, #tpu.memory_space<vmem>>, %arg9: memref<1x32xf32, #tpu.memory_space<vmem>>, %arg10: memref<2x32xf32, #tpu.memory_space<vmem>>) attributes {dimension_semantics = [#tpu.dimension_semantics<arbitrary>], iteration_bounds = array<i64: 1>, scalar_prefetch = 0 : i64, scratch_operands = 0 : i64, tpu.core_type = #tpu.core_type<tc>, window_params = [{pipeline_mode = #tpu.pipeline_mode<synchronous>, transform_indices = @transform_0, window_bounds = array<i64: 16, 1>}, {pipeline_mode = #tpu.pipeline_mode<synchronous>, transform_indices = @transform_1, window_bounds = array<i64: 16, 1>}, {pipeline_mode = #tpu.pipeline_mode<synchronous>, transform_indices = @transform_2, window_bounds = array<i64: 16, 1>}, {pipeline_mode = #tpu.pipeline_mode<synchronous>, transform_indices = @transform_3, window_bounds = array<i64: 2, 1>}, {pipeline_mode = #tpu.pipeline_mode<synchronous>, transform_indices = @transform_4, window_bounds = array<i64: 128, 32>}, {pipeline_mode = #tpu.pipeline_mode<synchronous>, transform_indices = @transform_5, window_bounds = array<i64: 3, 32, 32>}, {pipeline_mode = #tpu.pipeline_mode<synchronous>, transform_indices = @transform_6, window_bounds = array<i64: 1, 32>}, {pipeline_mode = #tpu.pipeline_mode<synchronous>, transform_indices = @transform_7, window_bounds = array<i64: 32, 32>}, {pipeline_mode = #tpu.pipeline_mode<synchronous>, transform_indices = @transform_8, window_bounds = array<i64: 1, 32>}, {pipeline_mode = #tpu.pipeline_mode<synchronous>, transform_indices = @transform_9, window_bounds = array<i64: 2, 32>}]} {
    %0 = tpu.iota {dimensions = array<i32: 1>} : vector<16x128xi32>
    %c0 = arith.constant 0 : index
    %c0_0 = arith.constant 0 : index
    %1 = vector.load %arg1[%c0, %c0_0] : memref<16x1xi32, #tpu.memory_space<vmem>>, vector<16x1xi32>
    %2 = vector.broadcast %1 : vector<16x1xi32> to vector<16x128xi32>
    %3 = arith.cmpi eq, %0, %2 : vector<16x128xi32>
    %c0_1 = arith.constant 0 : index
    %c0_2 = arith.constant 0 : index
    %4 = vector.load %arg2[%c0_1, %c0_2] : memref<16x1xi32, #tpu.memory_space<vmem>>, vector<16x1xi32>
    %c50_i32 = arith.constant 50 : i32
    %5 = vector.broadcast %c50_i32 : i32 to vector<16x1xi32>
    %6 = arith.addi %4, %5 : vector<16x1xi32>
    %7 = vector.broadcast %6 : vector<16x1xi32> to vector<16x128xi32>
    %8 = arith.cmpi eq, %0, %7 : vector<16x128xi32>
    %9 = arith.ori %3, %8 : vector<16x128xi1>
    %c0_3 = arith.constant 0 : index
    %c0_4 = arith.constant 0 : index
    %10 = vector.load %arg3[%c0_3, %c0_4] : memref<16x1xi32, #tpu.memory_space<vmem>>, vector<16x1xi32>
    %c82_i32 = arith.constant 82 : i32
    %11 = vector.broadcast %c82_i32 : i32 to vector<16x1xi32>
    %12 = arith.addi %10, %11 : vector<16x1xi32>
    %13 = vector.broadcast %12 : vector<16x1xi32> to vector<16x128xi32>
    %14 = arith.cmpi eq, %0, %13 : vector<16x128xi32>
    %15 = arith.ori %9, %14 : vector<16x128xi1>
    %cst = arith.constant 1.000000e+00 : f32
    %cst_5 = arith.constant 0.000000e+00 : f32
    %16 = vector.broadcast %cst : f32 to vector<16x128xf32>
    %17 = vector.broadcast %cst_5 : f32 to vector<16x128xf32>
    %18 = arith.select %15, %16, %17 : vector<16x128xi1>, vector<16x128xf32>
    %19 = arith.truncf %18 : vector<16x128xf32> to vector<16x128xbf16>
    %c0_6 = arith.constant 0 : index
    %c0_7 = arith.constant 0 : index
    %20 = vector.load %arg5[%c0_6, %c0_7] : memref<128x32xbf16, #tpu.memory_space<vmem>>, vector<128x32xbf16>
    %cst_8 = arith.constant dense<0.000000e+00> : vector<16x32xf32>
    %21 = tpu.matmul %19, %20, %cst_8 {dimension_numbers = #tpu.dot_dimension_numbers<[1], [0], [0], [1], [0, 0, 1, 1], [], []>} : vector<16x128xbf16>, vector<128x32xbf16>, vector<16x32xf32> -> vector<16x32xf32>
    %22 = arith.truncf %21 : vector<16x32xf32> to vector<16x32xbf16>
    %c0_9 = arith.constant 0 : index
    %c0_10 = arith.constant 0 : index
    %c0_11 = arith.constant 0 : index
    %23 = vector.load %arg6[%c0_9, %c0_10, %c0_11] : memref<3x32x32xbf16, #tpu.memory_space<vmem>>, vector<1x32x32xbf16>
    %24 = vector.shape_cast %23 : vector<1x32x32xbf16> to vector<32x32xbf16>
    %cst_12 = arith.constant dense<0.000000e+00> : vector<16x32xf32>
    %25 = tpu.matmul %22, %24, %cst_12 {dimension_numbers = #tpu.dot_dimension_numbers<[1], [0], [0], [1], [0, 0, 1, 1], [], []>} : vector<16x32xbf16>, vector<32x32xbf16>, vector<16x32xf32> -> vector<16x32xf32>
    %c1 = arith.constant 1 : index
    %c0_13 = arith.constant 0 : index
    %c0_14 = arith.constant 0 : index
    %26 = vector.load %arg6[%c1, %c0_13, %c0_14] : memref<3x32x32xbf16, #tpu.memory_space<vmem>>, vector<1x32x32xbf16>
    %27 = vector.shape_cast %26 : vector<1x32x32xbf16> to vector<32x32xbf16>
    %cst_15 = arith.constant dense<0.000000e+00> : vector<16x32xf32>
    %28 = tpu.matmul %22, %27, %cst_15 {dimension_numbers = #tpu.dot_dimension_numbers<[1], [0], [0], [1], [0, 0, 1, 1], [], []>} : vector<16x32xbf16>, vector<32x32xbf16>, vector<16x32xf32> -> vector<16x32xf32>
    %c2 = arith.constant 2 : index
    %c0_16 = arith.constant 0 : index
    %c0_17 = arith.constant 0 : index
    %29 = vector.load %arg6[%c2, %c0_16, %c0_17] : memref<3x32x32xbf16, #tpu.memory_space<vmem>>, vector<1x32x32xbf16>
    %30 = vector.shape_cast %29 : vector<1x32x32xbf16> to vector<32x32xbf16>
    %cst_18 = arith.constant dense<0.000000e+00> : vector<16x32xf32>
    %31 = tpu.matmul %22, %30, %cst_18 {dimension_numbers = #tpu.dot_dimension_numbers<[1], [0], [0], [1], [0, 0, 1, 1], [], []>} : vector<16x32xbf16>, vector<32x32xbf16>, vector<16x32xf32> -> vector<16x32xf32>
    %32 = tpu.iota {dimensions = array<i32: 0>} : vector<16x32xi32>
    %c8_i32 = arith.constant 8 : i32
    %c0_i32 = arith.constant 0 : i32
    %33 = arith.cmpi eq, %c8_i32, %c0_i32 : i32
    %c1_i32 = arith.constant 1 : i32
    %34 = arith.select %33, %c1_i32, %c8_i32 : i32
    %35 = vector.broadcast %34 : i32 to vector<16x32xi32>
    %36 = arith.remsi %32, %35 : vector<16x32xi32>
    %c0_i32_19 = arith.constant 0 : i32
    %37 = vector.broadcast %c0_i32_19 : i32 to vector<16x32xi32>
    %38 = arith.cmpi ne, %36, %37 : vector<16x32xi32>
    %c0_i32_20 = arith.constant 0 : i32
    %39 = vector.broadcast %c0_i32_20 : i32 to vector<16x32xi32>
    %40 = arith.cmpi slt, %36, %39 : vector<16x32xi32>
    %c0_i32_21 = arith.constant 0 : i32
    %41 = arith.cmpi slt, %34, %c0_i32_21 : i32
    %42 = vector.broadcast %41 : i1 to vector<16x32xi1>
    %43 = vector.broadcast %42 : vector<16x32xi1> to vector<16x32xi1>
    %44 = arith.xori %40, %43 : vector<16x32xi1>
    %45 = arith.andi %44, %38 : vector<16x32xi1>
    %46 = vector.broadcast %34 : i32 to vector<16x32xi32>
    %47 = arith.addi %36, %46 : vector<16x32xi32>
    %48 = arith.select %45, %47, %36 : vector<16x32xi1>, vector<16x32xi32>
    %c1_i32_22 = arith.constant 1 : i32
    %49 = tpu.dynamic_rotate %25 by %c1_i32_22 dim 0 : vector<16x32xf32>, i32 -> vector<16x32xf32>
    %c0_i32_23 = arith.constant 0 : i32
    %50 = vector.broadcast %c0_i32_23 : i32 to vector<16x32xi32>
    %51 = arith.cmpi eq, %48, %50 : vector<16x32xi32>
    %cst_24 = arith.constant 0.000000e+00 : f32
    %52 = vector.broadcast %cst_24 : f32 to vector<16x32xf32>
    %53 = arith.select %51, %52, %49 : vector<16x32xi1>, vector<16x32xf32>
    %c15_i32 = arith.constant 15 : i32
    %54 = tpu.dynamic_rotate %31 by %c15_i32 dim 0 : vector<16x32xf32>, i32 -> vector<16x32xf32>
    %c7_i32 = arith.constant 7 : i32
    %55 = vector.broadcast %c7_i32 : i32 to vector<16x32xi32>
    %56 = arith.cmpi eq, %48, %55 : vector<16x32xi32>
    %cst_25 = arith.constant 0.000000e+00 : f32
    %57 = vector.broadcast %cst_25 : f32 to vector<16x32xf32>
    %58 = arith.select %56, %57, %54 : vector<16x32xi1>, vector<16x32xf32>
    %59 = arith.addf %28, %53 : vector<16x32xf32>
    %60 = arith.addf %59, %58 : vector<16x32xf32>
    %c0_26 = arith.constant 0 : index
    %c0_27 = arith.constant 0 : index
    %61 = vector.load %arg7[%c0_26, %c0_27] : memref<1x32xf32, #tpu.memory_space<vmem>>, vector<1x32xf32>
    %62 = vector.broadcast %61 : vector<1x32xf32> to vector<16x32xf32>
    %63 = arith.addf %60, %62 : vector<16x32xf32>
    %cst_28 = arith.constant 0.000000e+00 : f32
    %64 = vector.broadcast %cst_28 : f32 to vector<16x32xf32>
    %65 = arith.maximumf %63, %64 : vector<16x32xf32>
    %66 = vector.shape_cast %65 : vector<16x32xf32> to vector<2x8x32xf32>
    %67 = tpu.iota {dimensions = array<i32: 1>} : vector<2x8x32xi32>
    %c0_29 = arith.constant 0 : index
    %c0_30 = arith.constant 0 : index
    %68 = vector.load %arg4[%c0_29, %c0_30] : memref<2x1xi32, #tpu.memory_space<vmem>>, vector<2x1xi32>
    %69 = vector.shape_cast %68 : vector<2x1xi32> to vector<2x1x1xi32>
    %70 = vector.broadcast %69 : vector<2x1x1xi32> to vector<2x8x32xi32>
    %71 = arith.cmpi slt, %67, %70 : vector<2x8x32xi32>
    %cst_31 = arith.constant 0.000000e+00 : f32
    %72 = vector.broadcast %cst_31 : f32 to vector<2x8x32xf32>
    %73 = arith.select %71, %66, %72 : vector<2x8x32xi1>, vector<2x8x32xf32>
    %cst_32 = arith.constant dense<0xFF800000> : vector<2x32xf32>
    %74 = vector.multi_reduction <maximumf>, %73, %cst_32 [1] : vector<2x8x32xf32> to vector<2x32xf32>
    %75 = arith.truncf %74 : vector<2x32xf32> to vector<2x32xbf16>
    %c0_33 = arith.constant 0 : index
    %c0_34 = arith.constant 0 : index
    %76 = vector.load %arg8[%c0_33, %c0_34] : memref<32x32xbf16, #tpu.memory_space<vmem>>, vector<32x32xbf16>
    %cst_35 = arith.constant dense<0.000000e+00> : vector<2x32xf32>
    %77 = tpu.matmul %75, %76, %cst_35 {dimension_numbers = #tpu.dot_dimension_numbers<[1], [0], [0], [1], [0, 0, 1, 1], [], []>} : vector<2x32xbf16>, vector<32x32xbf16>, vector<2x32xf32> -> vector<2x32xf32>
    %c0_36 = arith.constant 0 : index
    %c0_37 = arith.constant 0 : index
    %78 = vector.load %arg9[%c0_36, %c0_37] : memref<1x32xf32, #tpu.memory_space<vmem>>, vector<1x32xf32>
    %79 = vector.broadcast %78 : vector<1x32xf32> to vector<2x32xf32>
    %80 = arith.addf %77, %79 : vector<2x32xf32>
    %cst_38 = arith.constant 0.000000e+00 : f32
    %81 = vector.broadcast %cst_38 : f32 to vector<2x32xf32>
    %82 = arith.cmpf ogt, %80, %81 : vector<2x32xf32>
    %cst_39 = arith.constant 0.00999999977 : f32
    %83 = vector.broadcast %cst_39 : f32 to vector<2x32xf32>
    %84 = arith.mulf %83, %80 : vector<2x32xf32>
    %85 = arith.select %82, %80, %84 : vector<2x32xi1>, vector<2x32xf32>
    %c0_40 = arith.constant 0 : index
    %c0_41 = arith.constant 0 : index
    %86 = vector.load %arg10[%c0_40, %c0_41] : memref<2x32xf32, #tpu.memory_space<vmem>>, vector<2x32xf32>
    tpu.vector_store %arg10[%c0_40, %c0_41], %85 {strides = array<i32>} : memref<2x32xf32, #tpu.memory_space<vmem>>, vector<2x32xf32>,
    return
  }
  func.func @transform_0(%arg0: i32) -> (i32, i32) {
    %c0_i32 = arith.constant 0 : i32
    %c0_i32_0 = arith.constant 0 : i32
    %c0_i32_1 = arith.constant 0 : i32
    return %c0_i32, %c0_i32_0 : i32, i32
  }
  func.func @transform_1(%arg0: i32) -> (i32, i32) {
    %c0_i32 = arith.constant 0 : i32
    %c0_i32_0 = arith.constant 0 : i32
    %c0_i32_1 = arith.constant 0 : i32
    return %c0_i32, %c0_i32_0 : i32, i32
  }
  func.func @transform_2(%arg0: i32) -> (i32, i32) {
    %c0_i32 = arith.constant 0 : i32
    %c0_i32_0 = arith.constant 0 : i32
    %c0_i32_1 = arith.constant 0 : i32
    return %c0_i32, %c0_i32_0 : i32, i32
  }
  func.func @transform_3(%arg0: i32) -> (i32, i32) {
    %c0_i32 = arith.constant 0 : i32
    %c0_i32_0 = arith.constant 0 : i32
    %c0_i32_1 = arith.constant 0 : i32
    return %c0_i32, %c0_i32_0 : i32, i32
  }
  func.func @transform_4(%arg0: i32) -> (i32, i32) {
    %c0_i32 = arith.constant 0 : i32
    %c0_i32_0 = arith.constant 0 : i32
    %c0_i32_1 = arith.constant 0 : i32
    return %c0_i32, %c0_i32_0 : i32, i32
  }
  func.func @transform_5(%arg0: i32) -> (i32, i32, i32) {
    %c0_i32 = arith.constant 0 : i32
    %c0_i32_0 = arith.constant 0 : i32
    %c0_i32_1 = arith.constant 0 : i32
    %c0_i32_2 = arith.constant 0 : i32
    return %c0_i32, %c0_i32_0, %c0_i32_1 : i32, i32, i32
  }
  func.func @transform_6(%arg0: i32) -> (i32, i32) {
    %c0_i32 = arith.constant 0 : i32
    %c0_i32_0 = arith.constant 0 : i32
    %c0_i32_1 = arith.constant 0 : i32
    return %c0_i32, %c0_i32_0 : i32, i32
  }
  func.func @transform_7(%arg0: i32) -> (i32, i32) {
    %c0_i32 = arith.constant 0 : i32
    %c0_i32_0 = arith.constant 0 : i32
    %c0_i32_1 = arith.constant 0 : i32
    return %c0_i32, %c0_i32_0 : i32, i32
  }
  func.func @transform_8(%arg0: i32) -> (i32, i32) {
    %c0_i32 = arith.constant 0 : i32
    %c0_i32_0 = arith.constant 0 : i32
    %c0_i32_1 = arith.constant 0 : i32
    return %c0_i32, %c0_i32_0 : i32, i32
  }
  func.func @transform_9(%arg0: i32) -> (i32, i32) {
    %c0_i32 = arith.constant 0 : i32
    %c0_i32_0 = arith.constant 0 : i32
    %c0_i32_1 = arith.constant 0 : i32
    return %c0_i32, %c0_i32_0 : i32, i32
  }
}

</mosaic_0001>

<bundles_post_ra>
// kernel: tpu_custom_call.1
= control target key start
LH: loop header
LB: loop body
LE: loop exit
PB: predicated region body
PF: predicated region fallthrough
CT: control target
= control target key end

     0   :  { %v34_v2 = vlaneseq  ;;  %v721_v3 = vmov 0   ;;  %v722_v7 = vmov 1966171168   ;;  %v723_v13 = vmov 0.0   ;;  %s908_s0 = inlined_call_operand.vmem [shape: s32[16,1], index: 0, kind: input, shape index: {}]   ;;  %s909_s1 = inlined_call_operand.vmem [shape: s32[16,1], index: 1, kind: input, shape index: {}]   ;;  %s910_s2 = inlined_call_operand.vmem [shape: s32[16,1], index: 2, kind: input, shape index: {}]   ;;  %s911_s3 = inlined_call_operand.vmem [shape: s32[2,1], index: 3, kind: input, shape index: {}]   ;;  %s912_s4 = inlined_call_operand.vmem [shape: bf16[128,32], index: 4, kind: input, shape index: {}]   ;;  %s913_s5 = inlined_call_operand.vmem [shape: bf16[3,32,32], index: 5, kind: input, shape index: {}]   ;;  %s914_s6 = inlined_call_operand.vmem [shape: f32[1,32], index: 6, kind: input, shape index: {}]   ;;  %s915_s7 = inlined_call_operand.vmem [shape: bf16[32,32], index: 7, kind: input, shape index: {}]   ;;  %s916_s8 = inlined_call_operand.vmem [shape: f32[1,32], index: 8, kind: input, shape index: {}]   ;;  %s917_s9 = inlined_call_operand.hbm [shape: f32[2,32], index: 9, kind: output, shape index: {}]  }
   0x1   :  { %v36_v0 = vld [vmem:[%s908_s0] sm:$0xff]  ;;  %679 = vset.pattern.permute.xlu0 %v721_v3  ;;  %680 = vset.pattern.permute.xlu1 %v721_v3  ;;  %v37_v5 = vld [vmem:[%s908_s0 + $0x8] sm:$0xff]  ;;  %v428_v8 = vunpack.c.l.s4 %v722_v7  ;;  %v683_v26 = vld [vmem:[%s912_s4 + $0x10] sm:$0xff]   ;;  %vm724_vm0 = vmmov 0  }
   0x2   :  { %v46_v1 = vld [vmem:[%s909_s1] sm:$0xff]  ;;  %v47_v6 = vld [vmem:[%s909_s1 + $0x8] sm:$0xff]  ;;  %39 = vperm.xlu0 %679, %v36_v0   ;;  %v796_v12 = vshrl.u32 %v34_v2, 7  ;;  %621 = vmatprep.subr.bf16.mxu0 %v723_v13  ;;  %v684_v28 = vld [vmem:[%s912_s4 + $0x18] sm:$0xff]  }
   0x3   :  { %v48_v4 = vadd.s32 50, %v46_v1  ;;  %v49_v9 = vadd.s32 50, %v47_v6  ;;  %v60_v10 = vld [vmem:[%s910_s2] sm:$0xff]  ;;  %v61_v11 = vld [vmem:[%s910_s2 + $0x8] sm:$0xff]  ;;  %v429_v15 = vunpack.c.0.s8 %v428_v8  ;;  %641 = vmatprep.subr.bf16.mxu1 %v723_v13  ;;  %637 = vmatprep.mubr.msk.bf16.mxu0 %vm724_vm0, %v723_v13 }
   0x4   :  { %v595_v14 = vld.sshfl [vmem:[%s911_s3] sm:$0x11 pattern:$0x75316420]  ;;  %v62_v18 = vadd.s32 82, %v60_v10  ;;  %v443_v20 = vsub.s32 0, %v796_v12  ;;  %645 = vmatprep.mubr.msk.bf16.mxu1 %vm724_vm0, %v723_v13 }
   0x5   :  { %51 = vperm.xlu1 %680, %v48_v4   ;;  %v426_v16 = vcombine.high %v595_v14, %v595_v14  ;;  %v681_v17 = vld [vmem:[%s912_s4] sm:$0xff]   ;;  %v432_v19 = vsub.s32 %v429_v15, %v796_v12  ;;  %v682_v21 = vld [vmem:[%s912_s4 + $0x8] sm:$0xff]   ;;  %v63_v22 = vadd.s32 82, %v61_v11 }
   0x6   :  { %42 = vperm.xlu0 %679, %v37_v5   ;;  %622 = vmatpush3.bf16.msra.mxu0 %v681_v17  ;;  %v689_v29 = vld [vmem:[%s913_s5] sm:$0xff]  }
   0x7   :  { %v433_v23 = vrot.slane %v595_v14, %v432_v19  ;;  %v440_v24 = vrot.slane %v426_v16, %v432_v19  ;;  %623 = vmatprep.subr.bf16.mxu0 %v723_v13  ;;  %642 = vmatpush3.bf16.msra.mxu1 %v689_v29 }
   0x9   :  { %54 = vperm.xlu1 %680, %v49_v9   ;;  %v444_v25 = vrot.slane %v433_v23, %v443_v20  ;;  %v448_v27 = vrot.slane %v440_v24, %v443_v20 }
   0xa   :  { %65 = vperm.xlu0 %679, %v62_v18   ;;  %624 = vmatpush3.bf16.msra.mxu0 %v682_v21 }
   0xb   :  { %625 = vmatprep.subr.bf16.mxu0 %v723_v13 }
   0xd   :  { %68 = vperm.xlu1 %680, %v63_v22  }
   0xe   :  { %450 = vperm.xlu0 %679, %v444_v25   ;;  %626 = vmatpush3.bf16.msra.mxu0 %v683_v26 }
   0xf   :  { %627 = vmatprep.subr.bf16.mxu0 %v723_v13 }
  0x11   :  { %453 = vperm.xlu1 %680, %v448_v27  }
  0x12   :  { %14 = vsyncpa [#allocation3], 0  ;;  %628 = vmatpush3.bf16.msra.mxu0 %v684_v28  ;;  %v685_v30 = vld [vmem:[%s912_s4 + $0x20] sm:$0xff]   ;;  %643 = vmatprep.subr.bf16.mxu1 %v723_v13  ;;  %v686_v31 = vld [vmem:[%s912_s4 + $0x28] sm:$0xff]   ;;  %v35_v35 = vand.u32 127, %v34_v2  ;;  %vm199_vm12 = vcmask 261120  }
  0x13   :  { %629 = vmatprep.subr.bf16.mxu0 %v723_v13  ;;  %v687_v32 = vld [vmem:[%s912_s4 + $0x30] sm:$0xff]   ;;  %v688_v33 = vld [vmem:[%s912_s4 + $0x38] sm:$0xff]   ;;  %v725_v41 = vmov 1.0|1.0   ;;  %v690_v42 = vld [vmem:[%s913_s5 + $0x8] sm:$0xff]   ;;  %vm336_vm13 = vcmp.lt.s32.totalorder %v796_v12, 1 }
  0x14   :  { %644 = vmatpush3.bf16.msra.mxu1 %v690_v42  ;;  %v691_v46 = vld [vmem:[%s913_s5 + $0x20] sm:$0xff]   ;;  %v692_v49 = vld [vmem:[%s913_s5 + $0x28] sm:$0xff]   ;;  %v693_v50 = vld [vmem:[%s913_s5 + $0x10] sm:$0xff]   ;;  %v309_v62 = vadd.s32 8, %v796_v12  ;;  %v314_v1 = vand.u32 7, %v796_v12  ;;  %vm345_vm14 = vcmp.lt.s32.totalorder %v796_v12, 7 }
  0x15   :  { %649 = vmatprep.subr.bf16.mxu1 %v723_v13  ;;  %v694_v51 = vld [vmem:[%s913_s5 + $0x18] sm:$0xff]   ;;  %v695_v52 = vld [vmem:[%s915_s7] sm:$0xff]   ;;  %v696_v53 = vld [vmem:[%s915_s7 + $0x8] sm:$0xff]   ;;  %s726_s26 = smov [#allocation2]  }
  0x16   :  { %630 = vmatpush3.bf16.msra.mxu0 %v685_v30  ;;  %v321_v6 = vand.u32 7, %v309_v62  ;;  %vm339_vm15 = vcmp.eq.s32.totalorder %v314_v1, 0  ;;  %v594_v15 = vld [vmem:[%s914_s6] ss:$0 sm:$0xff]  ;;  %s559_s27 = sshll.u32 %s726_s26, 4  ;;  %s560_s27 = int_to_ptr.vmem [resolvable:$true] %s559_s27 }
  0x17   :  { %631 = vmatprep.subr.bf16.mxu0 %v723_v13  ;;  %s697_s28 = scalar_lea.vmem %s560_s27, 32  ;;  %p702_p1 = scmp.lt.s32.totalorder %s560_s27, %s560_s27 }
  0x18   :  { %p698_p0 = scmp.ne.s32.totalorder %s560_s27, %s697_s28  ;;  %p703_p2 = scmp.lt.s32.totalorder %s697_s28, %s697_s28 }
  0x1a   :  { %632 = vmatpush3.bf16.msra.mxu0 %v686_v31  ;;  %p704_p3 = por %p703_p2, %p702_p1 }
  0x1b   :  { %633 = vmatprep.subr.bf16.mxu0 %v723_v13 }
  0x1c   :  { %p705_p4 = pnand %p704_p3, %p698_p0 }
  0x1e   :  { %634 = vmatpush3.bf16.msra.mxu0 %v687_v32 }
  0x1f   :  { %635 = vmatprep.subr.bf16.mxu0 %v723_v13 }
  0x22   :  { %636 = vmatpush3.bf16.msra.mxu0 %v688_v33 }
  0x81   :  { %v40_v34 = vpop.permute.xlu0 %39 }
  0x82   :  { %vm44_vm1 = vcmp.eq.s32.totalorder %v35_v35, %v40_v34 }
  0x84   :  { %v52_v36 = vpop.permute.xlu1 %51 }
  0x85   :  { %v43_v37 = vpop.permute.xlu0 %42  ;;  %vm56_vm2 = vcmp.eq.s32.totalorder %v35_v35, %v52_v36 }
  0x86   :  { %vm45_vm3 = vcmp.eq.s32.totalorder %v35_v35, %v43_v37  ;;  %vm58_vm5 = vmor %vm44_vm1, %vm56_vm2  ;;  %vm340_vm1 = vcmp.eq.s32.totalorder %v321_v6, 0  ;;  %vm349_vm2 = vcmp.eq.s32.totalorder %v321_v6, 7 }
  0x88   :  { %v55_v38 = vpop.permute.xlu1 %54 }
  0x89   :  { %vm57_vm4 = vcmp.eq.s32.totalorder %v35_v35, %v55_v38  ;;  %v66_v39 = vpop.permute.xlu0 %65 }
  0x8a   :  { %vm59_vm6 = vmor %vm45_vm3, %vm57_vm4  ;;  %vm70_vm7 = vcmp.eq.s32.totalorder %v35_v35, %v66_v39 }
  0x8b   :  { %vm72_vm8 = vmor %vm58_vm5, %vm70_vm7  ;;  %vm490_vm5 = vcmask 1041409   ;;  %vm551_vm7 = vcmask 254976  }
  0x8c   :  { %v69_v40 = vpop.permute.xlu1 %68 }
  0x8d   :  { %vm71_vm9 = vcmp.eq.s32.totalorder %v35_v35, %v69_v40  ;;  %v451_v22 = vpop.permute.xlu0 %450 }
  0x8e   :  { %vm73_vm10 = vmor %vm59_vm6, %vm71_vm9  ;;  %vm455_vm3 = vcmp.lt.s32.totalorder %v796_v12, %v451_v22 }
  0x8f   :  { %vm575_vm11 = vmpackc.low %vm73_vm10, %vm72_vm8 }
  0x90   :  { %638 = vmatmul.mubr.msk.bf16.vlgmr.msra.gmra.mrb[0].mxu0 %vm575_vm11, %v725_v41  ;;  %v454_v25 = vpop.permute.xlu1 %453 }
  0x91   :  { %vm456_vm4 = vcmp.lt.s32.totalorder %v796_v12, %v454_v25 }
 0x163   :  { %v175_v43 = vpop.f32.mrb[0].mxu0 }
 0x164   :  { %v639_v44 = vpop.f32.mrb[1].mxu0 }
 0x165   :  { %v178_v45 = vpop.f32.mrb[2].mxu0 }
 0x166   :  { %v182_v47 = vpack.c.bf16 %v178_v45, %v175_v43  ;;  %v640_v48 = vpop.f32.mrb[3].mxu0 }
 0x168   :  { %646 = vmatmul.mubr.msk.bf16.vlgmr.msra.gmra.mrb[0].mxu1 %vm199_vm12, %v182_v47 }
 0x169   :  { %650 = vmatpush3.bf16.msra.mxu1 %v691_v46  ;;  %653 = vmatprep.mubr.msk.bf16.mxu1 %vm724_vm0, %v723_v13 }
 0x16a   :  { %651 = vmatprep.subr.bf16.mxu1 %v723_v13 }
 0x16d   :  { %652 = vmatpush3.bf16.msra.mxu1 %v692_v49 }
 0x16e   :  { %657 = vmatprep.subr.bf16.mxu1 %v723_v13 }
 0x170   :  { %654 = vmatmul.mubr.msk.bf16.vlgmr.msra.gmra.mrb[4].mxu1 %vm199_vm12, %v182_v47 }
 0x171   :  { %658 = vmatpush3.bf16.msra.mxu1 %v693_v50  ;;  %661 = vmatprep.mubr.msk.bf16.mxu1 %vm724_vm0, %v723_v13  ;;  %v596_v50 = vld [vmem:[%s916_s8] ss:$0 sm:$0xff] }
 0x172   :  { %659 = vmatprep.subr.bf16.mxu1 %v723_v13 }
 0x175   :  { %660 = vmatpush3.bf16.msra.mxu1 %v694_v51 }
 0x176   :  { %665 = vmatprep.subr.bf16.mxu1 %v723_v13 }
 0x178   :  { %662 = vmatmul.mubr.msk.bf16.vlgmr.msra.gmra.mrb[8].mxu1 %vm199_vm12, %v182_v47 }
 0x179   :  { %669 = vmatprep.mubr.msk.bf16.mxu1 %vm724_vm0, %v723_v13  ;;  %666 = vmatpush3.bf16.msra.mxu1 %v695_v52  ;;  %vm348_vm0 = vcmp.eq.s32.totalorder %v314_v1, 7 }
 0x17a   :  { %667 = vmatprep.subr.bf16.mxu1 %v723_v13 }
 0x17d   :  { %668 = vmatpush3.bf16.msra.mxu1 %v696_v53 }
 0x23b   :  { %v237_v54 = vpop.f32.mrb[0].mxu1 }
 0x23c   :  { %v647_v55 = vpop.f32.mrb[1].mxu1  ;;  %v334_v57 = vrot.slane %v237_v54, 7 }
 0x23d   :  { %v240_v56 = vpop.f32.mrb[2].mxu1 }
 0x23e   :  { %v335_v58 = vrot.slane %v240_v56, 7  ;;  %v648_v59 = vpop.f32.mrb[3].mxu1 }
 0x240   :  { %v338_v60 = vsel %vm336_vm13, %v335_v58, %v334_v57  ;;  %v337_v61 = vsel %vm336_vm13, %v334_v57, %v335_v58 }
 0x241   :  { %v341_v9 = vsel %vm339_vm15, 0.0, %v338_v60  ;;  %v342_v16 = vsel %vm340_vm1, 0.0, %v337_v61 }
 0x243   :  { %v300_v63 = vpop.f32.mrb[4].mxu1 }
 0x244   :  { %v655_v0 = vpop.f32.mrb[5].mxu1  ;;  %v343_v3 = vrot.slane %v300_v63, 1 }
 0x245   :  { %v303_v2 = vpop.f32.mrb[6].mxu1 }
 0x246   :  { %v344_v4 = vrot.slane %v303_v2, 1  ;;  %v656_v5 = vpop.f32.mrb[7].mxu1 }
 0x248   :  { %v346_v7 = vsel %vm345_vm14, %v343_v3, %v344_v4  ;;  %v347_v8 = vsel %vm345_vm14, %v344_v4, %v343_v3 }
 0x249   :  { %v350_v14 = vsel %vm348_vm0, 0.0, %v346_v7  ;;  %v351_v21 = vsel %vm349_vm2, 0.0, %v347_v8 }
 0x24b   :  { %v398_v10 = vpop.f32.mrb[8].mxu1 }
 0x24c   :  { %v399_v11 = vadd.f32 %v398_v10, %v341_v9  ;;  %v663_v13 = vpop.f32.mrb[9].mxu1 }
 0x24d   :  { %v401_v17 = vpop.f32.mrb[10].mxu1 }
 0x24e   :  { %v405_v18 = vadd.f32 %v399_v11, %v350_v14  ;;  %v402_v19 = vadd.f32 %v401_v17, %v342_v16  ;;  %v664_v20 = vpop.f32.mrb[11].mxu1 }
 0x250   :  { %v414_v23 = vadd.f32 %v594_v15, %v405_v18  ;;  %v406_v24 = vadd.f32 %v402_v19, %v351_v21 }
 0x252   :  { %v416_v26 = vmax.f32 %v414_v23, 0.0  ;;  %v415_v27 = vadd.f32 %v594_v15, %v406_v24 }
 0x254   :  { %v457_v28 = vsel %vm455_vm3, %v416_v26, 0.0  ;;  %v417_v29 = vmax.f32 %v415_v27, 0.0 }
 0x255   :  { %v459_v30 = vsel %vm199_vm12, %v457_v28, -inf }
 0x256   :  { %v460_v31 = vrot.slane %v459_v30, 4  ;;  %v458_v32 = vsel %vm456_vm4, %v417_v29, 0.0 }
 0x257   :  { %v466_v33 = vsel %vm199_vm12, %v458_v32, -inf }
 0x258   :  { %v461_v34 = vmax.f32 %v459_v30, %v460_v31  ;;  %v467_v35 = vrot.slane %v466_v33, 4 }
 0x25a   :  { %v462_v36 = vrot.slane %v461_v34, 2  ;;  %v468_v37 = vmax.f32 %v466_v33, %v467_v35 }
 0x25c   :  { %v463_v38 = vmax.f32 %v461_v34, %v462_v36  ;;  %v469_v39 = vrot.slane %v468_v37, 2 }
 0x25e   :  { %v464_v40 = vrot.slane %v463_v38, 1  ;;  %v470_v41 = vmax.f32 %v468_v37, %v469_v39 }
 0x260   :  { %v465_v42 = vmax.f32 %v463_v38, %v464_v40  ;;  %v471_v43 = vrot.slane %v470_v41, 1 }
 0x262   :  { %v473_v44 = vpack.c.bf16 %v465_v42, %v465_v42  ;;  %v472_v45 = vmax.f32 %v470_v41, %v471_v43 }
 0x264   :  { %v474_v46 = vpack.c.bf16 %v472_v45, %v472_v45  ;;  %v488_v12 = vunpack.c.l.b16 %v473_v44 }
 0x266   :  { %v489_v47 = vunpack.c.l.b16 %v474_v46 }
 0x268   :  { %v491_v48 = vsel %vm490_vm5, %v489_v47, %v488_v12 }
 0x269   :  { %v492_v49 = vpack.c.b16 %v491_v48, %v491_v48 }
 0x26b   :  { %670 = vmatmul.mubr.msk.bf16.vlgmr.msra.gmra.mrb[12].mxu1 %vm199_vm12, %v492_v49 }
 0x33e   :  { %v542_v51 = vpop.f32.mrb[12].mxu1 }
 0x33f   :  { %v543_v52 = vadd.f32 %v596_v50, %v542_v51  ;;  %v671_v53 = vpop.f32.mrb[13].mxu1 }
 0x340   :  { %v545_v54 = vpop.f32.mrb[14].mxu1 }
 0x341   :  { %v549_v55 = vmul.f32 0.01, %v543_v52  ;;  %v672_v56 = vpop.f32.mrb[15].mxu1  ;;  %vm548_vm6 = vcmp.gt.f32.partialorder %v543_v52, 0.0 }
 0x343   :  { %v550_v57 = vsel %vm548_vm6, %v543_v52, %v549_v55 }
 0x344   :  { %552 = vst.msk [vmem:[#allocation2] sm:$0x3] %vm551_vm7, %v550_v57 }
 0x345   :  { %708 = shalt.err (!%p705_p4)
}
 0x346   :  { %s709_s30 = scalar_lea.hbm %s917_s9, 32 }
 0x347   :  { %p710_p5 = scmp.ne.s32.totalorder %s917_s9, %s709_s30  ;;  %p713_p6 = scmp.lt.u32.totalorder %s709_s30, %s917_s9 }
 0x349   :  { %p715_p7 = pnand %p713_p6, %p710_p5 }
 0x34b   :  { %718 = shalt.err (!%p715_p7)
}
 0x34c   :  { %562 = dma.vmem_to_hbm [thread:$0]  %s560_s27, 32, %s917_s9, [#allocation3]  }
 0x34d   :  { %719 = dma.done.wait [#allocation3], 32  }
 0x34e   :  { %720 = vsyncadd [#allocation3], 4294967264 }
 0x34f   :  { %566 = vsyncpa [#allocation3], 1 }

</bundles_post_ra>
